<compile_context>
chip_gen: v6e
topology: v6e:2x2x1
jax: 0.10.0
libtpu: 0.0.40
codegen_flags: <defaults>
</compile_context>

<pallas_src>
import jax
import jax.numpy as jnp
from jax.experimental import pallas as pl
from jax.experimental.pallas import tpu as pltpu


def _round_up(x, m):
    return ((x + m - 1) // m) * m


def _sublane_multiple(dtype):
    # f32 -> 8, bf16 -> 16, int8/fp8 -> 32 sublanes per packed vreg row group.
    return {4: 8, 2: 16, 1: 32}[jnp.dtype(dtype).itemsize]


# -----------------------------------------------------------------------------
# Kernel body: one (tm, n_in) activation tile @ (n_in, tn) weight tile.
# MXU matmul with f32 accumulation, bias add on the VPU, sigmoid on the EUP
# (transcendental slot), lane-dense store of the (tm, tn) output tile.
# -----------------------------------------------------------------------------
def mlp_sigmoid_kernel(x_ref, w_ref, b_ref, o_ref):
    z = jnp.dot(x_ref[...], w_ref[...], preferred_element_type=jnp.float32)
    z = z + b_ref[...]                          # (tm, tn) + (1, tn) broadcast
    o_ref[...] = jax.nn.sigmoid(z).astype(o_ref.dtype)


# -----------------------------------------------------------------------------
# One-time parameter preprocessing (do NOT call per forward pass).
# Torch layout W:(n_out, n_in) -> transposed, lane-padded (n_in, n_out_pad).
# Padded columns/bias entries are zero; their sigmoid(0)=0.5 garbage is sliced off.
# -----------------------------------------------------------------------------
def prepare_mlp_sigmoid_params(w, b, *, compute_dtype=None, lane=128):
    n_out, n_in = w.shape
    n_out_p = _round_up(n_out, lane)
    w_dtype = compute_dtype if compute_dtype is not None else w.dtype
    w_t = jnp.zeros((n_in, n_out_p), dtype=w_dtype).at[:, :n_out].set(
        w.T.astype(w_dtype))
    bias = jnp.zeros((1, n_out_p), dtype=jnp.float32).at[0, :n_out].set(
        b.astype(jnp.float32))
    return w_t, bias, n_out


def mlp_sigmoid(x, w_t, bias, n_out, *, compute_dtype=None, out_dtype=None,
                tm=256, tn=256,
                resident_weight_bytes=4 * 1024 * 1024,
                vmem_cap_bytes=48 * 1024 * 1024):
    """y = sigmoid(x @ W.T + b) with pre-prepared (w_t, bias) from prepare_*()."""
    B, n_in = x.shape
    n_in_w, n_out_p = w_t.shape
    assert n_in == n_in_w, (n_in, n_in_w)
    out_dtype = out_dtype if out_dtype is not None else x.dtype

    x_dtype = compute_dtype if compute_dtype is not None else x.dtype
    sub = _sublane_multiple(x_dtype)
    x_isz = jnp.dtype(x_dtype).itemsize
    w_isz = jnp.dtype(w_t.dtype).itemsize
    o_isz = jnp.dtype(out_dtype).itemsize

    w_bytes = n_in * n_out_p * w_isz
    resident = w_bytes <= resident_weight_bytes
    tn_eff = n_out_p if resident else min(_round_up(tn, 128), n_out_p)

    # Row tile: don't over-pad tiny batches; respect the dtype's sublane packing.
    tm_eff = max(sub, min(_round_up(tm, sub), _round_up(B, sub)))

    # Double-buffered VMEM footprint; shrink tiles until it fits the v7x-safe cap.
    def vmem_need(tm_, tn_):
        return 2 * (tm_ * n_in * x_isz + n_in * tn_ * w_isz
                    + tm_ * tn_ * o_isz + tn_ * 4)

    while vmem_need(tm_eff, tn_eff) > vmem_cap_bytes and tm_eff > sub:
        tm_eff = max(sub, tm_eff // 2)
    while (not resident and vmem_need(tm_eff, tn_eff) > vmem_cap_bytes
           and tn_eff > 128):
        tn_eff = max(128, tn_eff // 2)

    b_p = _round_up(B, tm_eff)
    x_p = x.astype(x_dtype)
    if b_p != B:
        x_p = jnp.zeros((b_p, n_in), dtype=x_dtype).at[:B, :].set(x_p)

    n_i = b_p // tm_eff
    n_j = n_out_p // tn_eff
    vmem_limit = int(min(vmem_cap_bytes,
                         max(2 * vmem_need(tm_eff, tn_eff), 16 * 1024 * 1024)))

    # NOTE: n_in (the contraction dim) lives whole inside each block.  For very
    # large n_in, add a third "arbitrary" K grid axis with a VMEM f32 accumulator
    # and pl.when init/finalize (tiled-matmul pattern).  For skinny-K MLPs like
    # this one the real win is fusing neighbouring ops into the same pallas_call.
    if resident:
        # W and bias resident (fetched once); grid only over row tiles.
        # grid can be (1,) at tiny B; at realistic B it has >=2 parallel blocks
        # so v7x's second TensorCore gets work.
        grid = (n_i,)
        in_specs = [
            pl.BlockSpec((tm_eff, n_in), lambda i: (i, 0)),       # activations
            pl.BlockSpec((n_in, n_out_p), lambda i: (0, 0)),      # weights (resident)
            pl.BlockSpec((1, n_out_p), lambda i: (0, 0)),         # bias (resident)
        ]
        out_specs = pl.BlockSpec((tm_eff, n_out_p), lambda i: (i, 0))
        dims = ("parallel",)
    else:
        # Pick the loop order that minimizes HBM traffic: the operand whose block
        # index is constant along the inner axis is fetched only once.
        x_bytes = b_p * n_in * x_isz
        traffic_j_inner = x_bytes + w_bytes * n_i      # grid (i, j): W re-streamed
        traffic_i_inner = w_bytes + x_bytes * n_j      # grid (j, i): X re-streamed
        if traffic_i_inner <= traffic_j_inner:
            grid = (n_j, n_i)
            in_specs = [
                pl.BlockSpec((tm_eff, n_in), lambda j, i: (i, 0)),
                pl.BlockSpec((n_in, tn_eff), lambda j, i: (0, j)),
                pl.BlockSpec((1, tn_eff), lambda j, i: (0, j)),
            ]
            out_specs = pl.BlockSpec((tm_eff, tn_eff), lambda j, i: (i, j))
        else:
            grid = (n_i, n_j)
            in_specs = [
                pl.BlockSpec((tm_eff, n_in), lambda i, j: (i, 0)),
                pl.BlockSpec((n_in, tn_eff), lambda i, j: (0, j)),
                pl.BlockSpec((1, tn_eff), lambda i, j: (0, j)),
            ]
            out_specs = pl.BlockSpec((tm_eff, tn_eff), lambda i, j: (i, j))
        dims = ("parallel", "parallel")

    out = pl.pallas_call(
        mlp_sigmoid_kernel,
        out_shape=jax.ShapeDtypeStruct((b_p, n_out_p), out_dtype),
        grid_spec=pltpu.PrefetchScalarGridSpec(
            num_scalar_prefetch=0,
            grid=grid,
            in_specs=in_specs,
            out_specs=out_specs,
        ),
        compiler_params=pltpu.CompilerParams(
            dimension_semantics=dims,
            vmem_limit_bytes=vmem_limit,
        ),
    )(x_p, w_t, bias)

    # TODO(synk): nn.Dropout is implemented as inference-mode identity (torch eval
    # semantics); training-mode masking would use pltpu.prng_seed / prng_random_bits.
    return out[:B, :n_out]


if __name__ == "__main__":
    # Small shapes implied by the module: batch=8, n_in=32, n_out=32.
    B, n_in, n_out = 8, 32, 32

    key = jax.random.PRNGKey(0)
    kx, kw, kb = jax.random.split(key, 3)

    x = jax.random.normal(kx, (B, n_in), dtype=jnp.float32)
    # Deterministic init mimicking nn.Linear's uniform(-1/sqrt(n_in), 1/sqrt(n_in)).
    bound = 1.0 / (n_in ** 0.5)
    w = jax.random.uniform(kw, (n_out, n_in), dtype=jnp.float32,
                           minval=-bound, maxval=bound)   # torch layout (n_out, n_in)
    b = jax.random.uniform(kb, (n_out,), dtype=jnp.float32,
                           minval=-bound, maxval=bound)

    ref = jax.nn.sigmoid(x @ w.T + b)

    # ---- f32 path (exact-numerics default) -------------------------------------
    w_t, bias, nout = prepare_mlp_sigmoid_params(w, b)        # one-time prep
    out = jax.block_until_ready(mlp_sigmoid(x, w_t, bias, nout))
    assert out.shape == ref.shape, f"shape mismatch {out.shape} vs {ref.shape}"
    # Tolerance accommodates MXU f32 precision modes vs XLA's default matmul path.
    assert jnp.allclose(out, ref, atol=2e-3, rtol=2e-3), "f32 path mismatch"

    # ---- bf16 operand path (recommended default on v6e/v7x) --------------------
    w_t16, bias16, nout16 = prepare_mlp_sigmoid_params(
        w, b, compute_dtype=jnp.bfloat16)                     # one-time prep
    out16 = jax.block_until_ready(
        mlp_sigmoid(x, w_t16, bias16, nout16, compute_dtype=jnp.bfloat16))
    assert out16.shape == ref.shape
    assert jnp.allclose(out16, ref, atol=2e-2, rtol=2e-2), "bf16 path mismatch"

    print("KERNEL_OK")
</pallas_src>

<mosaic_0001>
module attributes {stable_mosaic.version = 11 : i64} {
  func.func @mlp_sigmoid_kernel(%arg0: i32, %arg1: memref<8x32xf32, #tpu.memory_space<vmem>>, %arg2: memref<32x128xf32, #tpu.memory_space<vmem>>, %arg3: memref<1x128xf32, #tpu.memory_space<vmem>>, %arg4: memref<8x128xf32, #tpu.memory_space<vmem>>) attributes {dimension_semantics = [#tpu.dimension_semantics<parallel>], iteration_bounds = array<i64: 1>, scalar_prefetch = 0 : i64, scratch_operands = 0 : i64, tpu.core_type = #tpu.core_type<tc>, window_params = [{transform_indices = @transform_0, window_bounds = array<i64: 8, 32>}, {pipeline_mode = #tpu.pipeline_mode<synchronous>, transform_indices = @transform_1, window_bounds = array<i64: 32, 128>}, {pipeline_mode = #tpu.pipeline_mode<synchronous>, transform_indices = @transform_2, window_bounds = array<i64: 1, 128>}, {transform_indices = @transform_3, window_bounds = array<i64: 8, 128>}]} {
    %c0 = arith.constant 0 : index
    %c0_0 = arith.constant 0 : index
    %0 = vector.load %arg1[%c0, %c0_0] : memref<8x32xf32, #tpu.memory_space<vmem>>, vector<8x32xf32>
    %c0_1 = arith.constant 0 : index
    %c0_2 = arith.constant 0 : index
    %1 = vector.load %arg2[%c0_1, %c0_2] : memref<32x128xf32, #tpu.memory_space<vmem>>, vector<32x128xf32>
    %cst = arith.constant dense<0.000000e+00> : vector<8x128xf32>
    %2 = tpu.matmul %0, %1, %cst {dimension_numbers = #tpu.dot_dimension_numbers<[1], [0], [0], [1], [0, 0, 1, 1], [], []>} : vector<8x32xf32>, vector<32x128xf32>, vector<8x128xf32> -> vector<8x128xf32>
    %c0_3 = arith.constant 0 : index
    %c0_4 = arith.constant 0 : index
    %3 = vector.load %arg3[%c0_3, %c0_4] : memref<1x128xf32, #tpu.memory_space<vmem>>, vector<1x128xf32>
    %4 = vector.broadcast %3 : vector<1x128xf32> to vector<8x128xf32>
    %5 = arith.addf %2, %4 : vector<8x128xf32>
    %6 = arith.negf %5 : vector<8x128xf32>
    %7 = math.exp %6 : vector<8x128xf32>
    %cst_5 = arith.constant 1.000000e+00 : f32
    %8 = vector.broadcast %cst_5 : f32 to vector<8x128xf32>
    %9 = arith.addf %8, %7 : vector<8x128xf32>
    %10 = arith.divf %8, %9 : vector<8x128xf32>
    %c0_6 = arith.constant 0 : index
    %c0_7 = arith.constant 0 : index
    %11 = vector.load %arg4[%c0_6, %c0_7] : memref<8x128xf32, #tpu.memory_space<vmem>>, vector<8x128xf32>
    tpu.vector_store %arg4[%c0_6, %c0_7], %10 {strides = array<i32>} : memref<8x128xf32, #tpu.memory_space<vmem>>, vector<8x128xf32>,
    return
  }
  func.func @transform_0(%arg0: i32) -> (i32, i32) {
    %c0_i32 = arith.constant 0 : i32
    %c0_i32_0 = arith.constant 0 : i32
    return %arg0, %c0_i32 : i32, i32
  }
  func.func @transform_1(%arg0: i32) -> (i32, i32) {
    %c0_i32 = arith.constant 0 : i32
    %c0_i32_0 = arith.constant 0 : i32
    %c0_i32_1 = arith.constant 0 : i32
    return %c0_i32, %c0_i32_0 : i32, i32
  }
  func.func @transform_2(%arg0: i32) -> (i32, i32) {
    %c0_i32 = arith.constant 0 : i32
    %c0_i32_0 = arith.constant 0 : i32
    %c0_i32_1 = arith.constant 0 : i32
    return %c0_i32, %c0_i32_0 : i32, i32
  }
  func.func @transform_3(%arg0: i32) -> (i32, i32) {
    %c0_i32 = arith.constant 0 : i32
    %c0_i32_0 = arith.constant 0 : i32
    return %arg0, %c0_i32 : i32, i32
  }
}

</mosaic_0001>

<bundles_post_ra>
// kernel: tpu_custom_call.1
= control target key start
LH: loop header
LB: loop body
LE: loop exit
PB: predicated region body
PF: predicated region fallthrough
CT: control target
= control target key end

     0   :  { %8 = vsyncpa [#allocation3], 0  ;;  %s285_s0 = inlined_call_operand.hbm [shape: f32[8,32], index: 0, kind: input, shape index: {}]   ;;  %s286_s1 = inlined_call_operand.hbm [shape: f32[32,128], index: 1, kind: input, shape index: {}]   ;;  %s287_s2 = inlined_call_operand.vmem [shape: f32[1,128], index: 2, kind: input, shape index: {}]   ;;  %s288_s3 = inlined_call_operand.hbm [shape: f32[8,128], index: 3, kind: output, shape index: {}]  }
   0x1   :  { %9 = vsyncpa [#allocation6], 0 }
   0x2   :  { %10 = vsyncpa [#allocation4], 0  ;;  %s246_s12 = smov [#allocation2]   ;;  %s247_s14 = smov [#allocation5]  }
   0x3   :  { %s17_s13 = sshll.u32 %s246_s12, 4  ;;  %s26_s15 = sshll.u32 %s247_s14, 4  ;;  %s18_s13 = int_to_ptr.vmem [resolvable:$true] %s17_s13  ;;  %s27_s15 = int_to_ptr.vmem [resolvable:$true] %s26_s15 }
   0x4   :  { %s188_s16 = scalar_lea.vmem %s18_s13, 128  ;;  %p193_p1 = scmp.lt.s32.totalorder %s18_s13, %s18_s13 }
   0x5   :  { %p189_p0 = scmp.ne.s32.totalorder %s18_s13, %s188_s16  ;;  %p194_p2 = scmp.lt.s32.totalorder %s188_s16, %s188_s16 }
   0x7   :  { %p195_p3 = por %p194_p2, %p193_p1 }
   0x9   :  { %p196_p4 = pnand %p195_p3, %p189_p0 }
   0xb   :  { %199 = shalt.err (!%p196_p4)
}
   0xc   :  { %20 = dma.hbm_to_vmem [thread:$0]  %s285_s0, 128, %s18_s13, [#allocation3]  }
   0xd   :  { %s208_s19 = scalar_lea.vmem %s27_s15, 512  ;;  %p213_p6 = scmp.lt.s32.totalorder %s27_s15, %s27_s15 }
   0xe   :  { %p209_p5 = scmp.ne.s32.totalorder %s27_s15, %s208_s19  ;;  %p214_p7 = scmp.lt.s32.totalorder %s208_s19, %s208_s19 }
  0x10   :  { %p215_p8 = por %p214_p7, %p213_p6 }
  0x12   :  { %p216_p9 = pnand %p215_p8, %p209_p5 }
  0x14   :  { %219 = shalt.err (!%p216_p9)
}
  0x15   :  { %s248_s20 = smov 128   ;;  %s249_s21 = smov 8  }
  0x16   :  { %32 = dma.hbm_to_vmem [thread:$0]  %s286_s1, 512, %s27_s15, [#allocation6], %s248_s20, %s248_s20, %s249_s21  }
  0x17   :  { %240 = dma.done.wait [#allocation3], 128  }
  0x18   :  { %241 = vsyncadd [#allocation3], 4294967168 }
  0x19   :  { %242 = dma.done.wait [#allocation6], 512  }
  0x1a   :  { %243 = vsyncadd [#allocation6], 4294966784  ;;  %v250_v0 = vmov 0.0   ;;  %vm251_vm0 = vmmov 0   ;;  %v45_v1 = vld [vmem:[#allocation5 + $0x18] sm:$0xff]  ;;  %v44_v2 = vld [vmem:[#allocation5 + $0x10] sm:$0xff] }
  0x1b   :  { %158 = vmatprep.subr.mxu0 %v250_v0  ;;  %166 = vmatprep.mubr.msk.f32.mxu0 %vm251_vm0, %v250_v0  ;;  %v43_v3 = vld [vmem:[#allocation5 + $0x8] sm:$0xff]  ;;  %v42_v4 = vld [vmem:[#allocation5] sm:$0xff]  ;;  %v41_v5 = vld [vmem:[#allocation2] sm:$0xff]  ;;  %vm53_vm1 = vcmask 261120   ;;  %s252_s24 = smov [#allocation7]  }
  0x1c   :  { %159 = vmatpush3.msra.mxu0 %v45_v1  ;;  %v150_v6 = vld [vmem:[%s287_s2] ss:$0 sm:$0xff]  ;;  %s140_s25 = sshll.u32 %s252_s24, 4  ;;  %s141_s25 = int_to_ptr.vmem [resolvable:$true] %s140_s25 }
  0x1d   :  { %160 = vmatprep.subr.mxu0 %v250_v0  ;;  %s220_s26 = scalar_lea.vmem %s141_s25, 128  ;;  %p225_p11 = scmp.lt.s32.totalorder %s141_s25, %s141_s25 }
  0x1e   :  { %161 = vmatpush3.msra.mxu0 %v44_v2  ;;  %p221_p10 = scmp.ne.s32.totalorder %s141_s25, %s220_s26  ;;  %p226_p12 = scmp.lt.s32.totalorder %s220_s26, %s220_s26 }
  0x1f   :  { %162 = vmatprep.subr.mxu0 %v250_v0 }
  0x20   :  { %163 = vmatpush3.msra.mxu0 %v43_v3  ;;  %p227_p13 = por %p226_p12, %p225_p11 }
  0x21   :  { %164 = vmatprep.subr.mxu0 %v250_v0 }
  0x22   :  { %165 = vmatpush3.msra.mxu0 %v42_v4  ;;  %p228_p0 = pnand %p227_p13, %p221_p10 }
  0x23   :  { %167 = vmatmul.mubr.msk.f32.vlgmr.msra.gmra.mxu0 %vm53_vm1, %v41_v5 }
  0xe3   :  { %v123_v7 = vpop.f32.mrf.mxu0 }
  0xe4   :  { %v124_v8 = vadd.f32 %v150_v6, %v123_v7 }
  0xe5   :  { %v168_v9 = vpop.f32.mrf.mxu0 }
  0xe6   :  { %v152_v10 = vmul.f32 -1.442695, %v124_v8 }
  0xe8   :  { %176 = vpow2.f32 %v152_v10 }
  0xf5   :  { %v177_v11 = vpop.eup %176 }
  0xf6   :  { %v130_v12 = vadd.f32 1.0, %v177_v11 }
  0xf8   :  { %178 = vrcp.f32 %v130_v12 }
 0x105   :  { %v179_v13 = vpop.eup %178 }
 0x106   :  { %133 = vst [vmem:[#allocation7] sm:$0xff] %v179_v13 }
 0x107   :  { %231 = shalt.err (!%p228_p0)
}
 0x108   :  { %143 = dma.vmem_to_hbm [thread:$0]  %s141_s25, 128, %s288_s3, [#allocation4]  }
 0x109   :  { %244 = dma.done.wait [#allocation4], 128  }
 0x10a   :  { %245 = vsyncadd [#allocation4], 4294967168 }
 0x10b   :  { %147 = vsyncpa [#allocation3], 1 }
 0x10c   :  { %148 = vsyncpa [#allocation6], 1 }
 0x10d   :  { %149 = vsyncpa [#allocation4], 1 }

</bundles_post_ra>
